<compile_context>
chip_gen: v6e
topology: v6e:2x2x1
jax: 0.10.0
libtpu: 0.0.40
codegen_flags: <defaults>
</compile_context>

<pallas_src>
import jax
import jax.numpy as jnp
from jax.experimental import pallas as pl
from jax.experimental.pallas import tpu as pltpu

LANES = 128
DEFAULT_BLOCK_ROWS = 8192  # (8192, 128) f32 tile = 4 MiB; in+out double-buffered ~16 MiB VMEM


def linear_kernel(x_ref, w_ref, b_ref, o_ref):
    # y = x * W[0, 0] + b[0]; W and b are SMEM scalars, x/o are lane-dense VMEM tiles.
    w = w_ref[0]
    b = b_ref[0]
    o_ref[...] = x_ref[...] * w + b


def _choose_block_rows(rows, requested):
    """Pick a block row count that satisfies the (8, 128) constraint and keeps
    the grid >= 2 steps (for 2-TC sharding on v7x) when the input is big enough."""
    if rows <= 16:
        # Tiny input: one full-array block (allowed regardless of % 8).
        return rows, 1
    br = min(requested, rows)
    br = max(8, (br // 8) * 8)          # sublane constraint: multiple of 8
    if pl.cdiv(rows, br) < 2:
        # Split into (at least) two blocks so both v7x TensorCores get work.
        br = max(8, (pl.cdiv(rows, 2) // 8) * 8)
    return br, pl.cdiv(rows, br)


def linear_forward(x, W, b, *, block_rows=DEFAULT_BLOCK_ROWS):
    """Linear(1, 1) forward: y = x @ W^T + b.

    x: (N, 1), W: (1, 1), b: (1,) -> (N, 1).
    The input is viewed as a lane-dense (rows, 128) slab (free reshape when
    N % 128 == 0; tiny tail pad otherwise) so this memory-bound scale+bias
    streams at (near) HBM roofline with unmasked stores.
    Works for f32; bf16 inputs stream with half the HBM traffic (mul/add done
    in the input dtype).
    """
    N = x.shape[0]
    dtype = x.dtype

    x_flat = x.reshape(-1)                       # free: (N, 1) is contiguous
    rows = max(1, pl.cdiv(N, LANES))
    n_padded = rows * LANES
    ragged = n_padded != N
    if ragged:
        # Pad only the tail of the last 128-lane row. Padded lanes compute
        # w*0 + b and are sliced off below; harmless.
        x_flat = jnp.pad(x_flat, (0, n_padded - N))
    x2d = x_flat.reshape(rows, LANES)            # free reshape (contiguous)

    br, grid_rows = _choose_block_rows(rows, block_rows)

    w_s = W.reshape(1).astype(dtype)  # scalar weight, lives in SMEM
    b_s = b.reshape(1).astype(dtype)  # scalar bias,   lives in SMEM

    itemsize = jnp.dtype(dtype).itemsize
    cost = pl.CostEstimate(
        flops=2 * n_padded,
        transcendentals=0,
        bytes_accessed=2 * n_padded * itemsize + 2 * itemsize,
    )

    y2d = pl.pallas_call(
        linear_kernel,
        out_shape=jax.ShapeDtypeStruct((rows, LANES), dtype),
        grid=(grid_rows,),
        in_specs=[
            pl.BlockSpec((br, LANES), lambda i: (i, 0)),
            pl.BlockSpec(memory_space=pltpu.MemorySpace.SMEM),
            pl.BlockSpec(memory_space=pltpu.MemorySpace.SMEM),
        ],
        out_specs=pl.BlockSpec((br, LANES), lambda i: (i, 0)),
        compiler_params=pltpu.CompilerParams(
            # Output tiles are independent: "parallel" lets v7x shard the grid
            # across its 2 TensorCores; neutral on single-TC v5e/v6e.
            dimension_semantics=("parallel",),
            # Raise scoped VMEM so 4 MiB tiles double-buffer cleanly even on
            # v5e's 16 MiB default; 32 MiB is within every generation's budget.
            vmem_limit_bytes=32 * 1024 * 1024,
        ),
        cost_estimate=cost,
    )(x2d, w_s, b_s)

    y_flat = y2d.reshape(-1)                     # free reshape
    if ragged:
        y_flat = y_flat[:N]                      # only pay the slice on ragged N
    return y_flat.reshape(N, 1)                  # free reshape


if __name__ == "__main__":
    key = jax.random.PRNGKey(0)
    N = 8
    x = jax.random.normal(key, (N, 1), dtype=jnp.float32)

    # Deterministic parameters (Linear(1, 1): weight (1, 1), bias (1,)).
    W = jnp.array([[0.5]], dtype=jnp.float32)
    b = jnp.array([0.25], dtype=jnp.float32)

    y = linear_forward(x, W, b)
    jax.block_until_ready(y)

    y_ref = x @ W.T + b
    assert y.shape == (N, 1)
    assert jnp.allclose(y, y_ref, atol=1e-6), "mismatch vs reference"

    # Ragged N (not a multiple of 128), multi-block grid, partial final block.
    N2 = 3000
    x2 = jax.random.normal(jax.random.PRNGKey(1), (N2, 1), dtype=jnp.float32)
    y2 = linear_forward(x2, W, b, block_rows=64)
    jax.block_until_ready(y2)
    assert jnp.allclose(y2, x2 @ W.T + b, atol=1e-6), "mismatch vs reference (ragged N)"

    # Fast path: N % 128 == 0 -> zero extra HBM passes (no pad, no slice), grid >= 2.
    N3 = 4096
    x3 = jax.random.normal(jax.random.PRNGKey(2), (N3, 1), dtype=jnp.float32)
    y3 = linear_forward(x3, W, b)
    jax.block_until_ready(y3)
    assert jnp.allclose(y3, x3 @ W.T + b, atol=1e-6), "mismatch vs reference (fast path)"

    print("KERNEL_OK")
</pallas_src>

<mosaic_0001>
module attributes {stable_mosaic.version = 11 : i64} {
  func.func @linear_kernel(%arg0: i32, %arg1: memref<1x128xf32, #tpu.memory_space<vmem>>, %arg2: memref<1xf32, #tpu.memory_space<smem>>, %arg3: memref<1xf32, #tpu.memory_space<smem>>, %arg4: memref<1x128xf32, #tpu.memory_space<vmem>>) attributes {dimension_semantics = [#tpu.dimension_semantics<parallel>], iteration_bounds = array<i64: 1>, scalar_prefetch = 0 : i64, scratch_operands = 0 : i64, tpu.core_type = #tpu.core_type<tc>, window_params = [{transform_indices = @transform_0, window_bounds = array<i64: 1, 128>}, {transform_indices = @transform_1, window_bounds = array<i64: 1>}, {transform_indices = @transform_2, window_bounds = array<i64: 1>}, {transform_indices = @transform_3, window_bounds = array<i64: 1, 128>}]} {
    %c0 = arith.constant 0 : index
    %0 = memref.load %arg2[%c0] : memref<1xf32, #tpu.memory_space<smem>>
    %c0_0 = arith.constant 0 : index
    %1 = memref.load %arg3[%c0_0] : memref<1xf32, #tpu.memory_space<smem>>
    %c0_1 = arith.constant 0 : index
    %c0_2 = arith.constant 0 : index
    %2 = vector.load %arg1[%c0_1, %c0_2] : memref<1x128xf32, #tpu.memory_space<vmem>>, vector<1x128xf32>
    %3 = vector.broadcast %0 : f32 to vector<1x128xf32>
    %4 = arith.mulf %2, %3 : vector<1x128xf32>
    %5 = vector.broadcast %1 : f32 to vector<1x128xf32>
    %6 = arith.addf %4, %5 : vector<1x128xf32>
    %c0_3 = arith.constant 0 : index
    %c0_4 = arith.constant 0 : index
    %7 = vector.load %arg4[%c0_3, %c0_4] : memref<1x128xf32, #tpu.memory_space<vmem>>, vector<1x128xf32>
    tpu.vector_store %arg4[%c0_3, %c0_4], %6 {strides = array<i32>} : memref<1x128xf32, #tpu.memory_space<vmem>>, vector<1x128xf32>,
    return
  }
  func.func @transform_0(%arg0: i32) -> (i32, i32) {
    %c0_i32 = arith.constant 0 : i32
    %c0_i32_0 = arith.constant 0 : i32
    return %arg0, %c0_i32 : i32, i32
  }
  func.func @transform_1(%arg0: i32) -> i32 {
    %c0_i32 = arith.constant 0 : i32
    %c0_i32_0 = arith.constant 0 : i32
    return %c0_i32 : i32
  }
  func.func @transform_2(%arg0: i32) -> i32 {
    %c0_i32 = arith.constant 0 : i32
    %c0_i32_0 = arith.constant 0 : i32
    return %c0_i32 : i32
  }
  func.func @transform_3(%arg0: i32) -> (i32, i32) {
    %c0_i32 = arith.constant 0 : i32
    %c0_i32_0 = arith.constant 0 : i32
    return %arg0, %c0_i32 : i32, i32
  }
}

</mosaic_0001>

<bundles_post_ra>
// kernel: tpu_custom_call.1
= control target key start
LH: loop header
LB: loop body
LE: loop exit
PB: predicated region body
PF: predicated region fallthrough
CT: control target
= control target key end

     0   :  { %s95_s0 = inlined_call_operand.vmem [shape: f32[1,128], index: 0, kind: input, shape index: {}]   ;;  %s96_s1 = inlined_call_operand.<no memory space> [shape: f32[1], index: 1, kind: input, shape index: {}]   ;;  %s97_s2 = inlined_call_operand.<no memory space> [shape: f32[1], index: 2, kind: input, shape index: {}]   ;;  %s98_s3 = inlined_call_operand.hbm [shape: f32[1,128], index: 3, kind: output, shape index: {}]  }
   0x1   :  { %v19_v0 = vld [vmem:[%s95_s0] sm:$0x1]  ;;  %v20_v1 = vstv %s96_s1  ;;  %v22_v2 = vstv %s97_s2 }
   0x2   :  { %10 = vsyncpa [#allocation5], 0  ;;  %v21_v3 = vmul.f32 %v20_v1, %v19_v0  ;;  %s62_s18 = smov [#allocation4]  }
   0x3   :  { %s31_s19 = sshll.u32 %s62_s18, 4  ;;  %s32_s19 = int_to_ptr.vmem [resolvable:$true] %s31_s19 }
   0x4   :  { %v23_v4 = vadd.f32 %v22_v2, %v21_v3  ;;  %s40_s20 = scalar_lea.vmem %s32_s19, 16  ;;  %s44_s21 = scalar_lea.vmem %s32_s19, 32 }
   0x5   :  { %p41_p0 = scmp.ne.s32.totalorder %s32_s19, %s40_s20  ;;  %p45_p1 = scmp.lt.s32.totalorder %s32_s19, %s32_s19 }
   0x6   :  { %24 = vst [vmem:[#allocation4] sm:$0x1] %v23_v4  ;;  %p46_p2 = scmp.lt.s32.totalorder %s44_s21, %s40_s20 }
   0x8   :  { %p47_p3 = por %p46_p2, %p45_p1 }
   0xa   :  { %p48_p4 = pnand %p47_p3, %p41_p0 }
   0xc   :  { %51 = shalt.err (!%p48_p4)
}
   0xd   :  { %34 = dma.vmem_to_hbm [thread:$0]  %s32_s19, 16, %s98_s3, [#allocation5]  }
   0xe   :  { %60 = dma.done.wait [#allocation5], 16  }
   0xf   :  { %61 = vsyncadd [#allocation5], 4294967280 }
  0x10   :  { %38 = vsyncpa [#allocation5], 1 }

</bundles_post_ra>
